<compile_context>
chip_gen: v7x
topology: tpu7x:2x2x1
jax: 0.10.0
libtpu: 0.0.40
codegen_flags: <defaults>
</compile_context>

<pallas_src>
import numpy as np
import jax
import jax.numpy as jnp
from jax import lax
from jax.experimental import pallas as pl
from jax.experimental.pallas import tpu as pltpu


# ----------------------------------------------------------------------------
# Pallas kernel: full bidirectional LSTM single step, both directions,
# one fused MXU pass + one fused tanh pass.
# ----------------------------------------------------------------------------
def _bilstm_step_kernel(ids_ref, ann_ref, state_ref, w_ref, out_ref):
    # ids:   [N, 1]  int32      token ids
    # ann:   [N, 2H] f32        annotation_seq
    # state: [N, 4H] f32        packed [h_f | h_b | c_f | c_b]
    # w:     [Vp+4H, 8H] bf16   fused RHS, gate-major columns
    #                           [i_f|i_b|f_f|f_b|g_f|g_b|o_f|o_b];
    #                           rows = [token->gates(+bias) | ann | h_f | h_b];
    #                           i/f/o columns pre-scaled by 0.5 (single-tanh trick)
    # out:   [N, 4H] f32        packed [h_f | h_b | c_f | c_b]
    N = ann_ref.shape[0]
    H2 = ann_ref.shape[1]            # 2*H
    H = H2 // 2
    Vp = w_ref.shape[0] - 2 * H2     # padded vocab rows

    st = state_ref[...]              # [N, 4H] single lane-dense load
    h_prev = st[:, :H2]              # [N, 2H] = [h_f | h_b]
    c_prev = st[:, H2:]              # [N, 2H] = [c_f | c_b]

    # embedding "gather" as a one-hot block folded into the single matmul
    # (bias already folded into the token rows of w).
    # TODO(synk): for realistic vocab sizes keep the token table in HBM and
    # row-DMA / scalar-prefetch-gather the N needed rows instead of one-hot
    # matmul (v7x VMEM hazard at V~30k).
    ids = ids_ref[...]                                                 # [N, 1]
    onehot = (ids == lax.broadcasted_iota(jnp.int32, (N, Vp), 1)
              ).astype(jnp.float32)                                    # [N, Vp]

    # single fused LHS [N, Vp + 4H]  (Vp + 2H + H + H)
    lhs = jnp.concatenate([onehot, ann_ref[...], h_prev], axis=-1)

    # ONE MXU pass, bf16 inputs, f32 accumulation
    gates = jnp.dot(lhs.astype(w_ref.dtype), w_ref[...],
                    preferred_element_type=jnp.float32)                # [N, 8H]

    # single tanh over the whole 8H=256-lane slab; i/f/o pre-activations were
    # pre-scaled by 0.5, so sigmoid(z) = 0.5*tanh(z/2) + 0.5 is a cheap affine
    # of the same tanh.  Gate-major blocks of width 2H: [i | f | g | o].
    t = jnp.tanh(gates)
    i = 0.5 * t[:, 0 * H2:1 * H2] + 0.5      # sigmoid(i)
    f = 0.5 * t[:, 1 * H2:2 * H2] + 0.5      # sigmoid(f)
    g =       t[:, 2 * H2:3 * H2]            # tanh(g)
    o = 0.5 * t[:, 3 * H2:4 * H2] + 0.5      # sigmoid(o)

    c_new = f * c_prev + i * g
    h_new = o * jnp.tanh(c_new)

    # single lane-dense [N, 4H] = [N, 128] unmasked store
    out_ref[...] = jnp.concatenate([h_new, c_new], axis=-1)


def bilstm_single_step(ids, ann, state, w_fused):
    """One fused bidirectional-LSTM step.

    Returns a packed [N, 4H] slab [h_f | h_b | c_f | c_b] (same layout as the
    `state` input, so it can be fed straight back in for the next step).
    """
    N, H2 = ann.shape
    vmem = pl.BlockSpec(memory_space=pltpu.MemorySpace.VMEM)
    return pl.pallas_call(
        _bilstm_step_kernel,
        out_shape=jax.ShapeDtypeStruct((N, 2 * H2), jnp.float32),
        in_specs=[vmem] * 4,
        out_specs=vmem,
    )(ids, ann, state, w_fused)


# ----------------------------------------------------------------------------
# Module wrapper (mirrors EncoderRNN_Answer.forward)
# ----------------------------------------------------------------------------
class EncoderRNNAnswer:
    def __init__(self, hidden_size, embedding_weight, key):
        H = hidden_size
        self.hidden_size = H
        self.embedding_weight = embedding_weight.astype(jnp.float32)   # frozen
        V, E = embedding_weight.shape
        self.embedding_dim = E
        IN = E + 2 * H

        # PyTorch LSTM default init: U(-1/sqrt(H), 1/sqrt(H)), deterministic.
        bound = 1.0 / np.sqrt(H)
        ks = jax.random.split(key, 8)

        def u(k, shape):
            return jax.random.uniform(k, shape, jnp.float32, -bound, bound)

        # raw PyTorch-layout weights (kept for the reference check); gate order i,f,g,o
        w_ih = jnp.stack([u(ks[0], (4 * H, IN)), u(ks[1], (4 * H, IN))])   # [2,4H,IN]
        w_hh = jnp.stack([u(ks[2], (4 * H, H)), u(ks[3], (4 * H, H))])     # [2,4H,H]
        b_ih = jnp.stack([u(ks[4], (4 * H,)), u(ks[5], (4 * H,))])
        b_hh = jnp.stack([u(ks[6], (4 * H,)), u(ks[7], (4 * H,))])
        self._w_ih, self._w_hh, self._b_ih, self._b_hh = w_ih, w_hh, b_ih, b_hh

        # --- kernel-side prep: gate-major columns, both directions fused (8H wide) ---
        # column block (2*k + d)*H : (2*k + d + 1)*H  <-  gate k of direction d
        w_ih_g = jnp.stack([w_ih[0].reshape(4, H, IN),
                            w_ih[1].reshape(4, H, IN)], axis=1)     # [4, 2, H, IN]
        w_in_big = jnp.transpose(w_ih_g, (3, 0, 1, 2)).reshape(IN, 8 * H)  # [IN, 8H]

        def _recurrent(d):
            # zero-padded so each direction's h only touches its own gate columns
            w = jnp.transpose(w_hh[d].reshape(4, H, H), (2, 0, 1))  # [H_in, 4, H_out]
            full = jnp.zeros((H, 4, 2, H), jnp.float32).at[:, :, d, :].set(w)
            return full.reshape(H, 8 * H)

        w_hf = _recurrent(0)                                        # [H, 8H]
        w_hb = _recurrent(1)                                        # [H, 8H]

        bias = b_ih + b_hh                                          # [2, 4H]
        b_big = jnp.stack([bias[0].reshape(4, H),
                           bias[1].reshape(4, H)], axis=1).reshape(8 * H)

        # Fold frozen embedding table + bias into one token->gates table (row per
        # token).  Valid only because the embedding is frozen (embedding_freeze=True).
        Vp = max(8, ((V + 7) // 8) * 8)
        table_pad = jnp.zeros((Vp, E), jnp.float32).at[:V].set(self.embedding_weight)
        w_tok = jnp.dot(table_pad, w_in_big[:E],
                        precision=jax.lax.Precision.HIGHEST) + b_big[None, :]

        # Fuse everything into ONE RHS, rows = [token | ann | h_f | h_b]
        # -> a single [N, Vp+4H] x [Vp+4H, 8H] MXU pass in the kernel.
        w_full = jnp.concatenate([w_tok, w_in_big[E:], w_hf, w_hb], axis=0)

        # Single-tanh trick: pre-scale i/f/o gate columns (incl. folded bias) by 0.5
        # so the kernel only needs tanh + a scalar affine (sigmoid(z)=0.5*tanh(z/2)+0.5).
        lane = jnp.arange(8 * H)
        col_scale = jnp.where((lane >= 4 * H) & (lane < 6 * H), 1.0, 0.5)
        w_full = w_full * col_scale[None, :]

        # bf16 weights, f32 accumulation in the kernel (halves weight DMA, native MXU).
        self.w_fused = w_full.astype(jnp.bfloat16)                  # [Vp+4H, 8H]
        self.vocab_pad = Vp

    # Packed fast path: state slab layout [h_f | h_b | c_f | c_b], identical to the
    # kernel output, so chained calls feed the previous output back unchanged.
    def step_packed(self, ids, ann, state):
        return bilstm_single_step(ids, ann, state, self.w_fused)

    def __call__(self, input_ids, annotation_seq, hidden, c):
        H = self.hidden_size
        ids = jnp.asarray(input_ids).reshape(-1, 1).astype(jnp.int32)   # [N, 1]
        ann = annotation_seq.astype(jnp.float32)                        # [N, 2H]
        N = ann.shape[0]

        if hidden is None:
            state = jnp.zeros((N, 4 * H), jnp.float32)
        else:
            state = jnp.concatenate(
                [hidden[0], hidden[1], c[0], c[1]], axis=-1).astype(jnp.float32)

        slab = self.step_packed(ids, ann, state)                        # [N, 4H]
        h_packed = slab[:, :2 * H]           # [N, 2H] = [h_fwd | h_bwd]
        c_packed = slab[:, 2 * H:]           # [N, 2H] = [c_fwd | c_bwd]

        output = h_packed[:, None, :]        # [N, 1, 2H] (bidirectional output at t=0)
        hidden_new = jnp.stack([h_packed[:, :H], h_packed[:, H:]], axis=0)  # [2, N, H]
        c_new = jnp.stack([c_packed[:, :H], c_packed[:, H:]], axis=0)       # [2, N, H]

        # TODO(synk): nn.Dropout(0.1) applied as eval-mode identity (no RNG mask).
        return output, (hidden_new, c_new)


# ----------------------------------------------------------------------------
# float64 numpy reference (full PyTorch semantics) for the correctness check.
# ----------------------------------------------------------------------------
def _reference_numpy(enc, input_ids, ann, h0, c0):
    H = enc.hidden_size
    table = np.asarray(enc.embedding_weight, np.float64)
    w_ih = np.asarray(enc._w_ih, np.float64)
    w_hh = np.asarray(enc._w_hh, np.float64)
    b = np.asarray(enc._b_ih, np.float64) + np.asarray(enc._b_hh, np.float64)
    ids = np.asarray(input_ids)
    x = np.concatenate([table[ids], np.asarray(ann, np.float64)], axis=1)
    h0 = np.asarray(h0, np.float64)
    c0 = np.asarray(c0, np.float64)
    sig = lambda z: 1.0 / (1.0 + np.exp(-z))
    hs, cs = [], []
    for d in range(2):
        gates = x @ w_ih[d].T + h0[d] @ w_hh[d].T + b[d]
        i = sig(gates[:, 0 * H:1 * H])
        f = sig(gates[:, 1 * H:2 * H])
        g = np.tanh(gates[:, 2 * H:3 * H])
        o = sig(gates[:, 3 * H:4 * H])
        cn = f * c0[d] + i * g
        hn = o * np.tanh(cn)
        hs.append(hn)
        cs.append(cn)
    h = np.stack(hs)
    c = np.stack(cs)
    out = np.concatenate([h[0], h[1]], axis=-1)[:, None, :]
    return out, h, c


if __name__ == "__main__":
    key = jax.random.PRNGKey(0)
    k_emb, k_ann, k_h, k_c, k_ids, k_params = jax.random.split(key, 6)

    vocab_size = 12
    embedding_dim = 16
    hidden_size = 32
    batch = 8

    embedding_weight = jax.random.normal(
        k_emb, (vocab_size, embedding_dim), jnp.float32)

    enc = EncoderRNNAnswer(hidden_size, embedding_weight, k_params)

    input_ids = jax.random.randint(k_ids, (batch,), 0, vocab_size)
    annotation_seq = jax.random.normal(
        k_ann, (batch, 2 * hidden_size), jnp.float32)
    hidden0 = jax.random.normal(k_h, (2, batch, hidden_size), jnp.float32)
    c0 = jax.random.normal(k_c, (2, batch, hidden_size), jnp.float32)

    output, (hidden_new, c_new) = enc(input_ids, annotation_seq, hidden0, c0)
    jax.block_until_ready((output, hidden_new, c_new))

    assert output.shape == (batch, 1, 2 * hidden_size)
    assert hidden_new.shape == (2, batch, hidden_size)
    assert c_new.shape == (2, batch, hidden_size)

    # correctness check against a float64 numpy reference of the PyTorch math.
    # tolerance budget: intentional bf16 weight/activation cast (rel eps ~4e-3)
    # accumulated over K=144 contraction + embedding/bias weight-fold
    # reassociation; observed error ~1e-3..1e-2, layout bugs would be O(0.1+).
    out_ref, h_ref, c_ref = _reference_numpy(enc, input_ids, annotation_seq,
                                             hidden0, c0)
    np.testing.assert_allclose(np.asarray(output, np.float64), out_ref,
                               rtol=2e-2, atol=2e-2)
    np.testing.assert_allclose(np.asarray(hidden_new, np.float64), h_ref,
                               rtol=2e-2, atol=2e-2)
    np.testing.assert_allclose(np.asarray(c_new, np.float64), c_ref,
                               rtol=2e-2, atol=2e-2)

    print("KERNEL_OK")
</pallas_src>

<mosaic_0001>
module attributes {stable_mosaic.version = 11 : i64} {
  func.func @_bilstm_step_kernel(%arg0: memref<8x1xi32, #tpu.memory_space<vmem>>, %arg1: memref<8x64xf32, #tpu.memory_space<vmem>>, %arg2: memref<8x128xf32, #tpu.memory_space<vmem>>, %arg3: memref<144x256xbf16, #tpu.memory_space<vmem>>, %arg4: memref<8x128xf32, #tpu.memory_space<vmem>>) attributes {dimension_semantics = [], scalar_prefetch = 0 : i64, scratch_operands = 0 : i64, tpu.core_type = #tpu.core_type<tc>} {
    %c0 = arith.constant 0 : index
    %c0_0 = arith.constant 0 : index
    %0 = vector.load %arg2[%c0, %c0_0] : memref<8x128xf32, #tpu.memory_space<vmem>>, vector<8x128xf32>
    %1 = vector.extract_strided_slice %0 {offsets = [0, 0], sizes = [8, 64], strides = [1, 1]} : vector<8x128xf32> to vector<8x64xf32>
    %2 = vector.extract_strided_slice %0 {offsets = [0, 64], sizes = [8, 64], strides = [1, 1]} : vector<8x128xf32> to vector<8x64xf32>
    %c0_1 = arith.constant 0 : index
    %c0_2 = arith.constant 0 : index
    %3 = vector.load %arg0[%c0_1, %c0_2] : memref<8x1xi32, #tpu.memory_space<vmem>>, vector<8x1xi32>
    %4 = tpu.iota {dimensions = array<i32: 1>} : vector<8x16xi32>
    %5 = vector.broadcast %3 : vector<8x1xi32> to vector<8x16xi32>
    %6 = arith.cmpi eq, %5, %4 : vector<8x16xi32>
    %7 = arith.extui %6 : vector<8x16xi1> to vector<8x16xi32>
    %8 = arith.sitofp %7 : vector<8x16xi32> to vector<8x16xf32>
    %c0_3 = arith.constant 0 : index
    %c0_4 = arith.constant 0 : index
    %9 = vector.load %arg1[%c0_3, %c0_4] : memref<8x64xf32, #tpu.memory_space<vmem>>, vector<8x64xf32>
    %10 = tpu.concatenate %8, %9, %1 in 1 : vector<8x16xf32>, vector<8x64xf32>, vector<8x64xf32> -> vector<8x144xf32>
    %11 = arith.truncf %10 : vector<8x144xf32> to vector<8x144xbf16>
    %c0_5 = arith.constant 0 : index
    %c0_6 = arith.constant 0 : index
    %12 = vector.load %arg3[%c0_5, %c0_6] : memref<144x256xbf16, #tpu.memory_space<vmem>>, vector<144x256xbf16>
    %cst = arith.constant dense<0.000000e+00> : vector<8x256xf32>
    %13 = tpu.matmul %11, %12, %cst {dimension_numbers = #tpu.dot_dimension_numbers<[1], [0], [0], [1], [0, 0, 1, 1], [], []>} : vector<8x144xbf16>, vector<144x256xbf16>, vector<8x256xf32> -> vector<8x256xf32>
    %14 = math.tanh %13 : vector<8x256xf32>
    %15 = vector.extract_strided_slice %14 {offsets = [0, 0], sizes = [8, 64], strides = [1, 1]} : vector<8x256xf32> to vector<8x64xf32>
    %cst_7 = arith.constant 5.000000e-01 : f32
    %16 = vector.broadcast %cst_7 : f32 to vector<8x64xf32>
    %17 = arith.mulf %16, %15 : vector<8x64xf32>
    %cst_8 = arith.constant 5.000000e-01 : f32
    %18 = vector.broadcast %cst_8 : f32 to vector<8x64xf32>
    %19 = arith.addf %17, %18 : vector<8x64xf32>
    %20 = vector.extract_strided_slice %14 {offsets = [0, 64], sizes = [8, 64], strides = [1, 1]} : vector<8x256xf32> to vector<8x64xf32>
    %cst_9 = arith.constant 5.000000e-01 : f32
    %21 = vector.broadcast %cst_9 : f32 to vector<8x64xf32>
    %22 = arith.mulf %21, %20 : vector<8x64xf32>
    %cst_10 = arith.constant 5.000000e-01 : f32
    %23 = vector.broadcast %cst_10 : f32 to vector<8x64xf32>
    %24 = arith.addf %22, %23 : vector<8x64xf32>
    %25 = vector.extract_strided_slice %14 {offsets = [0, 128], sizes = [8, 64], strides = [1, 1]} : vector<8x256xf32> to vector<8x64xf32>
    %26 = vector.extract_strided_slice %14 {offsets = [0, 192], sizes = [8, 64], strides = [1, 1]} : vector<8x256xf32> to vector<8x64xf32>
    %cst_11 = arith.constant 5.000000e-01 : f32
    %27 = vector.broadcast %cst_11 : f32 to vector<8x64xf32>
    %28 = arith.mulf %27, %26 : vector<8x64xf32>
    %cst_12 = arith.constant 5.000000e-01 : f32
    %29 = vector.broadcast %cst_12 : f32 to vector<8x64xf32>
    %30 = arith.addf %28, %29 : vector<8x64xf32>
    %31 = arith.mulf %24, %2 : vector<8x64xf32>
    %32 = arith.mulf %19, %25 : vector<8x64xf32>
    %33 = arith.addf %31, %32 : vector<8x64xf32>
    %34 = math.tanh %33 : vector<8x64xf32>
    %35 = arith.mulf %30, %34 : vector<8x64xf32>
    %36 = tpu.concatenate %35, %33 in 1 : vector<8x64xf32>, vector<8x64xf32> -> vector<8x128xf32>
    %c0_13 = arith.constant 0 : index
    %c0_14 = arith.constant 0 : index
    %37 = vector.load %arg4[%c0_13, %c0_14] : memref<8x128xf32, #tpu.memory_space<vmem>>, vector<8x128xf32>
    tpu.vector_store %arg4[%c0_13, %c0_14], %36 {strides = array<i32>} : memref<8x128xf32, #tpu.memory_space<vmem>>, vector<8x128xf32>,
    return
  }
}

</mosaic_0001>

<bundles_post_ra>
// kernel: tpu_custom_call.1
= control target key start
LH: loop header
LB: loop body
LE: loop exit
PB: predicated region body
PF: predicated region fallthrough
CT: control target
= control target key end

     0   :  { %9 = vsyncpa [#allocation3], 0  ;;  %s429_s0 = inlined_call_operand.vmem [shape: s32[8,1], index: 0, kind: input, shape index: {}]   ;;  %s430_s1 = inlined_call_operand.vmem [shape: f32[8,64], index: 1, kind: input, shape index: {}]   ;;  %s431_s2 = inlined_call_operand.vmem [shape: f32[8,128], index: 2, kind: input, shape index: {}]   ;;  %s432_s3 = inlined_call_operand.hbm [shape: bf16[144,256], index: 3, kind: input, shape index: {}]   ;;  %s433_s4 = inlined_call_operand.hbm [shape: f32[8,128], index: 4, kind: output, shape index: {}]  }
   0x1   :  { %10 = vsyncpa [#allocation4], 0  ;;  %s358_s15 = smov [#allocation2]   ;;  %s310_s19 = scalar_lea.hbm %s432_s3, 2304 }
   0x2   :  { %s22_s16 = sshll.u32 %s358_s15, 4  ;;  %p311_p0 = scmp.ne.s32.totalorder %s432_s3, %s310_s19  ;;  %s23_s16 = int_to_ptr.vmem [resolvable:$true] %s22_s16 }
   0x3   :  { %p314_p1 = scmp.lt.u32.totalorder %s310_s19, %s432_s3 }
   0x5   :  { %p316_p2 = pnand %p314_p1, %p311_p0 }
   0x7   :  { %319 = shalt.err (!%p316_p2)
}
   0x8   :  { %s320_s24 = scalar_lea.vmem %s23_s16, 2304  ;;  %p325_p4 = scmp.lt.s32.totalorder %s23_s16, %s23_s16 }
   0x9   :  { %p321_p3 = scmp.ne.s32.totalorder %s23_s16, %s320_s24  ;;  %p326_p5 = scmp.lt.s32.totalorder %s320_s24, %s320_s24 }
   0xb   :  { %p327_p6 = por %p326_p5, %p325_p4 }
   0xd   :  { %p328_p7 = pnand %p327_p6, %p321_p3 }
   0xf   :  { %331 = shalt.err (!%p328_p7)
}
  0x10   :  { %s359_s25 = smov 128   ;;  %s360_s26 = smov 8  }
  0x11   :  { %28 = dma.hbm_to_vmem [thread:$0]  %s432_s3, 2304, %s23_s16, [#allocation3], %s359_s25, %s359_s25, %s360_s26  }
  0x12   :  { %354 = dma.done.wait [#allocation3], 2304  }
  0x13   :  { %355 = vsyncadd [#allocation3], 4294964992  ;;  %v361_v0 = vmov 0   ;;  %v34_v1 = vld [vmem:[%s429_s0] sm:$0xff]  ;;  %s362_s9 = smov 80   ;;  %s363_s0 = smov 16   ;;  %v35_v24 = vlaneseq }
  0x14   :  { %276 = vset.pattern.permute.xlu0 %v361_v0  ;;  %v43_v2 = vld [vmem:[%s430_s1] sm:$0xff]  ;;  %v280_v6 = vld [vmem:[#allocation2 + $0x14] ss:$8 sps:$4 sm:$0xff]   ;;  %v282_v7 = vld [vmem:[#allocation2 + $0x10] ss:$8 sps:$4 sm:$0xff]   ;;  %vm52_vm0 = vcmask 130048  }
  0x15   :  { %v413_v3 = vld [vmem:[%s431_s2] sm:$0xff]  ;;  %38 = vperm.xlu0 %276, %v34_v1   ;;  %v286_v10 = vld [vmem:[#allocation2 + $0x34] ss:$8 sps:$4 sm:$0xff]   ;;  %v288_v11 = vld [vmem:[#allocation2 + $0x30] ss:$8 sps:$4 sm:$0xff]   ;;  %v36_v25 = vand.u32 127, %v35_v24 }
  0x16   :  { %49 = vrot.lane.b32.xlu1 %v413_v3, %s362_s9  ;;  %v277_v4 = vld [vmem:[#allocation2 + $0x4] ss:$8 sps:$4 sm:$0xff]   ;;  %v279_v5 = vld [vmem:[#allocation2] ss:$8 sps:$4 sm:$0xff]   ;;  %v292_v14 = vld [vmem:[#allocation2 + $0x54] ss:$8 sps:$4 sm:$0xff]  }
  0x17   :  { %169 = vmatprep.subr.bf16.mxu0 %v277_v4  ;;  %v283_v8 = vld [vmem:[#allocation2 + $0x24] ss:$8 sps:$4 sm:$0xff]   ;;  %v285_v9 = vld [vmem:[#allocation2 + $0x20] ss:$8 sps:$4 sm:$0xff]   ;;  %v294_v15 = vld [vmem:[#allocation2 + $0x50] ss:$8 sps:$4 sm:$0xff]  }
  0x18   :  { %170 = vmatpush1.bf16.msra.mxu0 %v279_v5  ;;  %v289_v12 = vld [vmem:[#allocation2 + $0x44] ss:$8 sps:$4 sm:$0xff]   ;;  %v291_v13 = vld [vmem:[#allocation2 + $0x40] ss:$8 sps:$4 sm:$0xff]   ;;  %v298_v18 = vld [vmem:[#allocation2 + $0x74] ss:$8 sps:$4 sm:$0xff]  }
  0x19   :  { %45 = vrot.lane.b32.xlu0 %v43_v2, %s363_s0  ;;  %171 = vmatprep.subr.bf16.mxu0 %v280_v6  ;;  %v295_v16 = vld [vmem:[#allocation2 + $0x64] ss:$8 sps:$4 sm:$0xff]   ;;  %v297_v17 = vld [vmem:[#allocation2 + $0x60] ss:$8 sps:$4 sm:$0xff]   ;;  %v300_v19 = vld [vmem:[#allocation2 + $0x70] ss:$8 sps:$4 sm:$0xff]  }
  0x1a   :  { %v301_v20 = vld [vmem:[#allocation2 + $0x84] ss:$8 sps:$4 sm:$0xff]   ;;  %v303_v21 = vld [vmem:[#allocation2 + $0x80] ss:$8 sps:$4 sm:$0xff]   ;;  %vm54_vm2 = vcmask 654336   ;;  %v364_v27 = vmov 0.0  }
  0x1b   :  { %s365_s1 = smov 64   ;;  %s366_s2 = smov [#allocation5]   ;;  %vm229_vm3 = vcmask 523264  }
  0x1c   :  { %172 = vmatpush1.bf16.msra.mxu0 %v282_v7  ;;  %s238_s3 = sshll.u32 %s366_s2, 4  ;;  %s239_s3 = int_to_ptr.vmem [resolvable:$true] %s238_s3 }
  0x1d   :  { %173 = vmatprep.subr.bf16.mxu0 %v283_v8  ;;  %s332_s10 = scalar_lea.vmem %s239_s3, 128  ;;  %p337_p9 = scmp.lt.s32.totalorder %s239_s3, %s239_s3 }
  0x1e   :  { %p333_p8 = scmp.ne.s32.totalorder %s239_s3, %s332_s10  ;;  %p338_p10 = scmp.lt.s32.totalorder %s332_s10, %s332_s10 }
  0x20   :  { %174 = vmatpush1.bf16.msra.mxu0 %v285_v9  ;;  %p339_p11 = por %p338_p10, %p337_p9 }
  0x21   :  { %175 = vmatprep.subr.bf16.mxu0 %v286_v10 }
  0x22   :  { %p340_p12 = pnand %p339_p11, %p333_p8 }
  0x24   :  { %176 = vmatpush1.bf16.msra.mxu0 %v288_v11 }
  0x25   :  { %177 = vmatprep.subr.bf16.mxu0 %v289_v12 }
  0x28   :  { %178 = vmatpush1.bf16.msra.mxu0 %v291_v13 }
  0x29   :  { %179 = vmatprep.subr.bf16.mxu0 %v292_v14 }
  0x2c   :  { %180 = vmatpush1.bf16.msra.mxu0 %v294_v15 }
  0x2d   :  { %181 = vmatprep.subr.bf16.mxu0 %v295_v16 }
  0x30   :  { %182 = vmatpush1.bf16.msra.mxu0 %v297_v17 }
  0x31   :  { %183 = vmatprep.subr.bf16.mxu0 %v298_v18 }
  0x34   :  { %184 = vmatpush1.bf16.msra.mxu0 %v300_v19 }
  0x35   :  { %185 = vmatprep.subr.bf16.mxu0 %v301_v20 }
  0x38   :  { %186 = vmatpush1.bf16.msra.mxu0 %v303_v21 }
  0x88   :  { %v50_v22 = vpop.permute.xlu1 %49 }
  0x89   :  { %v57_v23 = vpack.c.bf16 %v50_v22, %v50_v22 }
  0x8b   :  { %266 = vmatprep.mubr.msk.bf16.mxu0 %vm52_vm0, %v57_v23 }
  0x94   :  { %v39_v26 = vpop.permute.xlu0 %38 }
  0x95   :  { %vm40_vm1 = vcmp.eq.s32.totalorder %v39_v26, %v36_v25 }
  0x96   :  { %v247_v28 = vsel %vm40_vm1, 1.0, %v364_v27 }
  0x98   :  { %v46_v29 = vpop.permute.xlu0 %45 }
  0x99   :  { %v53_v30 = vsel %vm52_vm0, %v247_v28, %v46_v29 }
  0x9a   :  { %v55_v31 = vsel %vm54_vm2, %v53_v30, %v50_v22 }
  0x9b   :  { %v56_v32 = vpack.c.bf16 %v55_v31, %v55_v31 }
  0x9d   :  { %202 = vmatmul.mubr.bf16.vlgmr.msra.gmra.mrb[0].mxu0 %v56_v32 }
 0x170   :  { %v203_v33 = vpop.f32.mrb[0].mxu0 }
 0x171   :  { %304 = vtanh.f32 %v203_v33  ;;  %v205_v34 = vpop.f32.mrb[1].mxu0 }
 0x172   :  { %v207_v35 = vpop.f32.mrb[2].mxu0  ;;  %306 = vtanh.f32 %v205_v34 }
 0x173   :  { %v208_v36 = vpop.f32.mrb[3].mxu0 }
 0x17b   :  { %v305_v37 = vpop.eup %304 }
 0x17c   :  { %v212_v38 = vmul.f32 0.5, %v305_v37  ;;  %v307_v40 = vpop.eup %306 }
 0x17d   :  { %v214_v45 = vmul.f32 0.5, %v307_v40 }
 0x17e   :  { %v213_v39 = vadd.f32 0.5, %v212_v38 }
 0x17f   :  { %v215_v46 = vadd.f32 0.5, %v214_v45 }
 0x180   :  { %v217_v41 = vmul.f32 %v307_v40, %v213_v39  ;;  %v216_v42 = vmul.f32 %v213_v39, %v413_v3 }
 0x182   :  { %219 = vrot.lane.b32.xlu1 %v217_v41, %s365_s1 }
 0x1f4   :  { %v220_v43 = vpop.permute.xlu1 %219 }
 0x1f5   :  { %v222_v44 = vadd.f32 %v220_v43, %v216_v42 }
 0x1f7   :  { %308 = vtanh.f32 %v222_v44 }
 0x201   :  { %v309_v47 = vpop.eup %308 }
 0x202   :  { %v224_v48 = vmul.f32 %v309_v47, %v215_v46 }
 0x204   :  { %226 = vrot.lane.b32.xlu0 %v224_v48, %s365_s1 }
 0x276   :  { %v227_v49 = vpop.permute.xlu0 %226 }
 0x277   :  { %v230_v50 = vsel %vm229_vm3, %v227_v49, %v222_v44 }
 0x278   :  { %231 = vst [vmem:[#allocation5] sm:$0xff] %v230_v50 }
 0x279   :  { %343 = shalt.err (!%p340_p12)
}
 0x27a   :  { %s344_s13 = scalar_lea.hbm %s433_s4, 128 }
 0x27b   :  { %p345_p13 = scmp.ne.s32.totalorder %s433_s4, %s344_s13  ;;  %p348_p0 = scmp.lt.u32.totalorder %s344_s13, %s433_s4 }
 0x27d   :  { %p350_p1 = pnand %p348_p0, %p345_p13 }
 0x27f   :  { %353 = shalt.err (!%p350_p1)
}
 0x280   :  { %241 = dma.vmem_to_hbm [thread:$0]  %s239_s3, 128, %s433_s4, [#allocation4]  }
 0x281   :  { %356 = dma.done.wait [#allocation4], 128  }
 0x282   :  { %357 = vsyncadd [#allocation4], 4294967168 }
 0x283   :  { %245 = vsyncpa [#allocation3], 1 }
 0x284   :  { %246 = vsyncpa [#allocation4], 1 }

</bundles_post_ra>
